<compile_context>
chip_gen: v6e
topology: v6e:2x2x1
jax: 0.10.0
libtpu: 0.0.40
codegen_flags: <defaults>
</compile_context>

<pallas_src>
import functools

import jax
import jax.numpy as jnp
from jax.experimental import pallas as pl
from jax.experimental.pallas import tpu as pltpu

_EPS = 1e-5


# -----------------------------------------------------------------------------
# Kernels
# -----------------------------------------------------------------------------
def _bn_train(v, gamma, beta, inv_n):
    """Training-mode BatchNorm1d on an f32 (N, C) tile, one-pass statistics."""
    s1 = jnp.sum(v, axis=0, keepdims=True)
    s2 = jnp.sum(v * v, axis=0, keepdims=True)
    mean = s1 * inv_n
    var = s2 * inv_n - mean * mean          # biased variance (PyTorch train mode)
    return (v - mean) * jax.lax.rsqrt(var + _EPS) * gamma + beta


def _proj_head_fused_kernel(x_ref, wt_ref, g_ref, b_ref, o_ref):
    """Single grid step: the whole fc -> BN -> relu chain, statically unrolled.

    x_ref  : (N, C)    bf16  input
    wt_ref : (L, C, C) bf16  stacked W_l^T (all resident in VMEM)
    g_ref  : (L, 1, C) f32   BN gammas
    b_ref  : (L, 1, C) f32   BN betas
    o_ref  : (N, C)          output
    """
    n_layers = wt_ref.shape[0]
    inv_n = jnp.float32(1.0 / x_ref.shape[0])
    h = x_ref[...]                                        # bf16 activation
    v = None
    for l in range(n_layers):                             # static 3-layer unroll
        v = jnp.dot(h, wt_ref[l], preferred_element_type=jnp.float32)
        v = _bn_train(v, g_ref[l], b_ref[l], inv_n)
        if l + 1 < n_layers:
            h = jnp.maximum(v, 0.0).astype(jnp.bfloat16)  # ReLU between layers
    o_ref[...] = v.astype(o_ref.dtype)                    # no ReLU after last BN


def _proj_head_stream_kernel(x_ref, wt_ref, g_ref, b_ref, o_ref, h_ref):
    """One grid step == one layer: h <- relu?(BN(h @ W_l^T)).

    x_ref  : (N, C) bf16 — input (consumed only at layer 0)
    wt_ref : (C, C) bf16 — W_l^T for this layer (double-buffered by Pallas)
    g_ref  : (1, C) f32  — BN gamma for this layer
    b_ref  : (1, C) f32  — BN beta  for this layer
    o_ref  : (N, C)      — output, written only on the last layer
    h_ref  : (N, C) bf16 — carried activation scratch
    """
    layer = pl.program_id(0)
    last = pl.num_programs(0) - 1

    @pl.when(layer == 0)
    def _():
        h_ref[...] = x_ref[...]           # bf16 bit-copy (x pre-cast in wrapper)

    v = jnp.dot(h_ref[...], wt_ref[...], preferred_element_type=jnp.float32)
    v = _bn_train(v, g_ref[...], b_ref[...], jnp.float32(1.0 / h_ref.shape[0]))

    @pl.when(layer < last)
    def _():
        h_ref[...] = jnp.maximum(v, 0.0).astype(jnp.bfloat16)   # ReLU between layers

    @pl.when(layer == last)
    def _():
        o_ref[...] = v.astype(o_ref.dtype)                      # no ReLU after last BN


# -----------------------------------------------------------------------------
# Wrappers
# -----------------------------------------------------------------------------
def _physical_vmem_bytes():
    try:
        return int(pltpu.get_tpu_info().vmem_capacity_bytes)
    except Exception:                      # conservative fallback (v7x per-core)
        return 64 << 20


def _vmem_limit_bytes(n, c, n_layers, streaming):
    """Working-set estimate, capped by the actual chip's VMEM (not a fixed 64 MiB)."""
    cap = int(0.85 * _physical_vmem_bytes())
    if streaming:
        need = (2 * c * c * 2              # double-buffered bf16 W^T block
                + n * c * 2                # resident bf16 x
                + n * c * 2                # bf16 carried-activation scratch
                + 2 * n * c * 4            # f32 output block (pipeline buffers)
                + n_layers * 4 * c * 4)    # gamma/beta blocks
    else:
        need = (n_layers * c * c * 2       # all bf16 weights resident
                + n * c * 2                # bf16 x
                + n * c * 4                # f32 output
                + n_layers * 2 * c * 4)    # gamma/beta
    return int(min(max(2 * need + (4 << 20), 32 << 20), cap))


@functools.partial(jax.jit, static_argnames=("out_dtype", "streaming"))
def _proj_head_pallas(x, wt_stack, gamma_stack, beta_stack,
                      out_dtype=jnp.float32, streaming=False):
    n, c = x.shape
    n_layers = wt_stack.shape[0]
    x = x.astype(jnp.bfloat16)             # reference also feeds bf16 to every matmul
    vmem_limit = _vmem_limit_bytes(n, c, n_layers, streaming)

    if not streaming:
        # Single grid step: whole arrays as single VMEM blocks, unrolled chain.
        return pl.pallas_call(
            _proj_head_fused_kernel,
            out_shape=jax.ShapeDtypeStruct((n, c), out_dtype),
            compiler_params=pltpu.CompilerParams(vmem_limit_bytes=vmem_limit),
        )(x, wt_stack, gamma_stack, beta_stack)

    # Layer-grid streaming path: one bf16 (C, C) weight block per step,
    # double-buffered by the BlockSpec pipeline; bf16 activation carried in scratch.
    grid_spec = pltpu.PrefetchScalarGridSpec(
        num_scalar_prefetch=0,
        grid=(n_layers,),
        in_specs=[
            pl.BlockSpec((n, c), lambda l: (0, 0)),           # x (bf16), resident
            pl.BlockSpec((None, c, c), lambda l: (l, 0, 0)),  # W_l^T, streamed
            pl.BlockSpec((None, 1, c), lambda l: (l, 0, 0)),  # gamma_l
            pl.BlockSpec((None, 1, c), lambda l: (l, 0, 0)),  # beta_l
        ],
        out_specs=pl.BlockSpec((n, c), lambda l: (0, 0)),
        scratch_shapes=[pltpu.VMEM((n, c), jnp.bfloat16)],
    )
    return pl.pallas_call(
        _proj_head_stream_kernel,
        out_shape=jax.ShapeDtypeStruct((n, c), out_dtype),
        grid_spec=grid_spec,
        compiler_params=pltpu.CompilerParams(
            dimension_semantics=("arbitrary",),   # carried scratch + revisited output
            vmem_limit_bytes=vmem_limit,
        ),
    )(x, wt_stack, gamma_stack, beta_stack)


# -----------------------------------------------------------------------------
# Parameter construction / prep (host-side, one-time) and public forward
# -----------------------------------------------------------------------------
def init_proj_head_params(key, ch, bn_names=None):
    """Deterministic synthetic parameters matching proj_head.__init__ shapes."""
    keys = jax.random.split(key, 8)
    scale = 1.0 / jnp.sqrt(jnp.float32(ch))
    params = {
        # nn.Linear stores W as (out, in); keep that convention here.
        "fc1_w": jax.random.uniform(keys[0], (ch, ch), jnp.float32, -scale, scale),
        # fc1 bias kept for module fidelity; the kernel drops it (training-BN cancels it).
        "fc1_b": jax.random.uniform(keys[1], (ch,), jnp.float32, -scale, scale),
        "fc2_w": jax.random.uniform(keys[2], (ch, ch), jnp.float32, -scale, scale),
        "fc3_w": jax.random.uniform(keys[3], (ch, ch), jnp.float32, -scale, scale),
    }
    names = bn_names if bn_names is not None else [None]
    for i, layer in enumerate(("bn1", "bn2", "bn3")):
        kg, kb = jax.random.split(keys[4 + i], 2)
        params[layer] = {}
        for j, name in enumerate(names):
            params[layer][name] = {
                "gamma": jax.random.uniform(jax.random.fold_in(kg, j), (ch,),
                                            jnp.float32, 0.5, 1.5),
                "beta": 0.1 * jax.random.normal(jax.random.fold_in(kb, j), (ch,),
                                                jnp.float32),
            }
    return params


def prepare_proj_head_params(params, bn_name=None):
    """One-time prep (NOT per call): transpose + bf16-cast + stack the weights,
    and select/stack the BN affine params for `bn_name` (batch_norm_multiple glue)."""
    ch = params["fc1_w"].shape[0]
    wt_stack = jnp.stack(
        [params["fc1_w"].T, params["fc2_w"].T, params["fc3_w"].T]
    ).astype(jnp.bfloat16)                                      # (3, C, C) = W_l^T
    gamma_stack = jnp.stack(
        [params[l][bn_name]["gamma"].reshape(1, ch) for l in ("bn1", "bn2", "bn3")]
    ).astype(jnp.float32)                                       # (3, 1, C)
    beta_stack = jnp.stack(
        [params[l][bn_name]["beta"].reshape(1, ch) for l in ("bn1", "bn2", "bn3")]
    ).astype(jnp.float32)                                       # (3, 1, C)
    return {"wt": wt_stack, "gamma": gamma_stack, "beta": beta_stack}


def proj_head_forward(prepared, x, out_dtype=jnp.float32, mode="auto"):
    """mode: 'auto' | 'fused' (all weights resident, 1 grid step) | 'stream'
    (per-layer grid with double-buffered weight DMA)."""
    if mode == "auto":
        wt = prepared["wt"]
        weight_bytes = wt.size * wt.dtype.itemsize
        mode = "fused" if weight_bytes <= (12 << 20) else "stream"
    return _proj_head_pallas(
        x, prepared["wt"], prepared["gamma"], prepared["beta"],
        out_dtype=out_dtype, streaming=(mode == "stream"),
    )


# -----------------------------------------------------------------------------
# Pure-JAX reference (mirrors the PyTorch forward, training-mode BN)
# -----------------------------------------------------------------------------
def _reference_forward(params, x, bn_name=None):
    """Matmul numerics mirror the kernel (bf16 operands, f32 accumulation)."""
    def bn(h, layer):
        p = params[layer][bn_name]
        mean = jnp.mean(h, axis=0, keepdims=True)
        var = jnp.mean((h - mean) ** 2, axis=0, keepdims=True)
        return (h - mean) / jnp.sqrt(var + _EPS) * p["gamma"] + p["beta"]

    def mm(h, w):
        return jnp.dot(h.astype(jnp.bfloat16), w.T.astype(jnp.bfloat16),
                       preferred_element_type=jnp.float32)

    h = mm(x, params["fc1_w"]) + params["fc1_b"]   # bias kept here; BN1 cancels it
    h = jnp.maximum(bn(h, "bn1"), 0.0)
    h = mm(h, params["fc2_w"])
    h = jnp.maximum(bn(h, "bn2"), 0.0)
    h = mm(h, params["fc3_w"])
    return bn(h, "bn3")


if __name__ == "__main__":
    key = jax.random.PRNGKey(0)
    kx, kp = jax.random.split(key)

    # Small but lane/sublane-friendly shapes: C multiple of 128 (full vreg lanes,
    # unmasked stores), N multiple of 16 (bf16 sublane packing).
    batch, ch = 16, 128
    bn_names = ["normal", "pgd"]

    x = jax.random.normal(kx, (batch, ch), jnp.float32)
    params = init_proj_head_params(kp, ch, bn_names=bn_names)
    prepared = prepare_proj_head_params(params, bn_name="pgd")
    ref = _reference_forward(params, x, bn_name="pgd")

    # Exercise both execution paths and check against the reference.
    for mode in ("fused", "stream"):
        out = jax.block_until_ready(proj_head_forward(prepared, x, mode=mode))
        assert out.shape == (batch, ch) and out.dtype == jnp.float32
        assert jnp.allclose(out, ref, atol=3e-3, rtol=3e-3), f"mismatch vs reference ({mode})"

    print("KERNEL_OK")
</pallas_src>

<mosaic_0001>
module attributes {stable_mosaic.version = 11 : i64} {
  func.func @_proj_head_fused_kernel(%arg0: memref<16x128xbf16, #tpu.memory_space<vmem>>, %arg1: memref<3x128x128xbf16, #tpu.memory_space<vmem>>, %arg2: memref<3x1x128xf32, #tpu.memory_space<vmem>>, %arg3: memref<3x1x128xf32, #tpu.memory_space<vmem>>, %arg4: memref<16x128xf32, #tpu.memory_space<vmem>>) attributes {dimension_semantics = [], scalar_prefetch = 0 : i64, scratch_operands = 0 : i64, tpu.core_type = #tpu.core_type<tc>} {
    %c0 = arith.constant 0 : index
    %c0_0 = arith.constant 0 : index
    %0 = vector.load %arg0[%c0, %c0_0] : memref<16x128xbf16, #tpu.memory_space<vmem>>, vector<16x128xbf16>
    %c0_1 = arith.constant 0 : index
    %c0_2 = arith.constant 0 : index
    %c0_3 = arith.constant 0 : index
    %1 = vector.load %arg1[%c0_1, %c0_2, %c0_3] : memref<3x128x128xbf16, #tpu.memory_space<vmem>>, vector<1x128x128xbf16>
    %2 = vector.shape_cast %1 : vector<1x128x128xbf16> to vector<128x128xbf16>
    %cst = arith.constant dense<0.000000e+00> : vector<16x128xf32>
    %3 = tpu.matmul %0, %2, %cst {dimension_numbers = #tpu.dot_dimension_numbers<[1], [0], [0], [1], [0, 0, 1, 1], [], []>} : vector<16x128xbf16>, vector<128x128xbf16>, vector<16x128xf32> -> vector<16x128xf32>
    %c0_4 = arith.constant 0 : index
    %c0_5 = arith.constant 0 : index
    %c0_6 = arith.constant 0 : index
    %4 = vector.load %arg2[%c0_4, %c0_5, %c0_6] : memref<3x1x128xf32, #tpu.memory_space<vmem>>, vector<1x1x128xf32>
    %5 = vector.shape_cast %4 : vector<1x1x128xf32> to vector<1x128xf32>
    %c0_7 = arith.constant 0 : index
    %c0_8 = arith.constant 0 : index
    %c0_9 = arith.constant 0 : index
    %6 = vector.load %arg3[%c0_7, %c0_8, %c0_9] : memref<3x1x128xf32, #tpu.memory_space<vmem>>, vector<1x1x128xf32>
    %7 = vector.shape_cast %6 : vector<1x1x128xf32> to vector<1x128xf32>
    %cst_10 = arith.constant dense<0.000000e+00> : vector<128xf32>
    %8 = vector.multi_reduction <add>, %3, %cst_10 [0] : vector<16x128xf32> to vector<128xf32>
    %9 = vector.shape_cast %8 : vector<128xf32> to vector<1x128xf32>
    %10 = arith.mulf %3, %3 : vector<16x128xf32>
    %cst_11 = arith.constant dense<0.000000e+00> : vector<128xf32>
    %11 = vector.multi_reduction <add>, %10, %cst_11 [0] : vector<16x128xf32> to vector<128xf32>
    %12 = vector.shape_cast %11 : vector<128xf32> to vector<1x128xf32>
    %cst_12 = arith.constant 6.250000e-02 : f32
    %13 = vector.broadcast %cst_12 : f32 to vector<1x128xf32>
    %14 = arith.mulf %9, %13 : vector<1x128xf32>
    %cst_13 = arith.constant 6.250000e-02 : f32
    %15 = vector.broadcast %cst_13 : f32 to vector<1x128xf32>
    %16 = arith.mulf %12, %15 : vector<1x128xf32>
    %17 = arith.mulf %14, %14 : vector<1x128xf32>
    %18 = arith.subf %16, %17 : vector<1x128xf32>
    %19 = vector.broadcast %14 : vector<1x128xf32> to vector<16x128xf32>
    %20 = arith.subf %3, %19 : vector<16x128xf32>
    %cst_14 = arith.constant 9.99999974E-6 : f32
    %21 = vector.broadcast %cst_14 : f32 to vector<1x128xf32>
    %22 = arith.addf %18, %21 : vector<1x128xf32>
    %23 = math.rsqrt %22 : vector<1x128xf32>
    %24 = vector.broadcast %23 : vector<1x128xf32> to vector<16x128xf32>
    %25 = arith.mulf %20, %24 : vector<16x128xf32>
    %26 = vector.broadcast %5 : vector<1x128xf32> to vector<16x128xf32>
    %27 = arith.mulf %25, %26 : vector<16x128xf32>
    %28 = vector.broadcast %7 : vector<1x128xf32> to vector<16x128xf32>
    %29 = arith.addf %27, %28 : vector<16x128xf32>
    %cst_15 = arith.constant 0.000000e+00 : f32
    %30 = vector.broadcast %cst_15 : f32 to vector<16x128xf32>
    %31 = arith.maximumf %29, %30 : vector<16x128xf32>
    %32 = arith.truncf %31 : vector<16x128xf32> to vector<16x128xbf16>
    %c1 = arith.constant 1 : index
    %c0_16 = arith.constant 0 : index
    %c0_17 = arith.constant 0 : index
    %33 = vector.load %arg1[%c1, %c0_16, %c0_17] : memref<3x128x128xbf16, #tpu.memory_space<vmem>>, vector<1x128x128xbf16>
    %34 = vector.shape_cast %33 : vector<1x128x128xbf16> to vector<128x128xbf16>
    %cst_18 = arith.constant dense<0.000000e+00> : vector<16x128xf32>
    %35 = tpu.matmul %32, %34, %cst_18 {dimension_numbers = #tpu.dot_dimension_numbers<[1], [0], [0], [1], [0, 0, 1, 1], [], []>} : vector<16x128xbf16>, vector<128x128xbf16>, vector<16x128xf32> -> vector<16x128xf32>
    %c1_19 = arith.constant 1 : index
    %c0_20 = arith.constant 0 : index
    %c0_21 = arith.constant 0 : index
    %36 = vector.load %arg2[%c1_19, %c0_20, %c0_21] : memref<3x1x128xf32, #tpu.memory_space<vmem>>, vector<1x1x128xf32>
    %37 = vector.shape_cast %36 : vector<1x1x128xf32> to vector<1x128xf32>
    %c1_22 = arith.constant 1 : index
    %c0_23 = arith.constant 0 : index
    %c0_24 = arith.constant 0 : index
    %38 = vector.load %arg3[%c1_22, %c0_23, %c0_24] : memref<3x1x128xf32, #tpu.memory_space<vmem>>, vector<1x1x128xf32>
    %39 = vector.shape_cast %38 : vector<1x1x128xf32> to vector<1x128xf32>
    %cst_25 = arith.constant dense<0.000000e+00> : vector<128xf32>
    %40 = vector.multi_reduction <add>, %35, %cst_25 [0] : vector<16x128xf32> to vector<128xf32>
    %41 = vector.shape_cast %40 : vector<128xf32> to vector<1x128xf32>
    %42 = arith.mulf %35, %35 : vector<16x128xf32>
    %cst_26 = arith.constant dense<0.000000e+00> : vector<128xf32>
    %43 = vector.multi_reduction <add>, %42, %cst_26 [0] : vector<16x128xf32> to vector<128xf32>
    %44 = vector.shape_cast %43 : vector<128xf32> to vector<1x128xf32>
    %cst_27 = arith.constant 6.250000e-02 : f32
    %45 = vector.broadcast %cst_27 : f32 to vector<1x128xf32>
    %46 = arith.mulf %41, %45 : vector<1x128xf32>
    %cst_28 = arith.constant 6.250000e-02 : f32
    %47 = vector.broadcast %cst_28 : f32 to vector<1x128xf32>
    %48 = arith.mulf %44, %47 : vector<1x128xf32>
    %49 = arith.mulf %46, %46 : vector<1x128xf32>
    %50 = arith.subf %48, %49 : vector<1x128xf32>
    %51 = vector.broadcast %46 : vector<1x128xf32> to vector<16x128xf32>
    %52 = arith.subf %35, %51 : vector<16x128xf32>
    %cst_29 = arith.constant 9.99999974E-6 : f32
    %53 = vector.broadcast %cst_29 : f32 to vector<1x128xf32>
    %54 = arith.addf %50, %53 : vector<1x128xf32>
    %55 = math.rsqrt %54 : vector<1x128xf32>
    %56 = vector.broadcast %55 : vector<1x128xf32> to vector<16x128xf32>
    %57 = arith.mulf %52, %56 : vector<16x128xf32>
    %58 = vector.broadcast %37 : vector<1x128xf32> to vector<16x128xf32>
    %59 = arith.mulf %57, %58 : vector<16x128xf32>
    %60 = vector.broadcast %39 : vector<1x128xf32> to vector<16x128xf32>
    %61 = arith.addf %59, %60 : vector<16x128xf32>
    %cst_30 = arith.constant 0.000000e+00 : f32
    %62 = vector.broadcast %cst_30 : f32 to vector<16x128xf32>
    %63 = arith.maximumf %61, %62 : vector<16x128xf32>
    %64 = arith.truncf %63 : vector<16x128xf32> to vector<16x128xbf16>
    %c2 = arith.constant 2 : index
    %c0_31 = arith.constant 0 : index
    %c0_32 = arith.constant 0 : index
    %65 = vector.load %arg1[%c2, %c0_31, %c0_32] : memref<3x128x128xbf16, #tpu.memory_space<vmem>>, vector<1x128x128xbf16>
    %66 = vector.shape_cast %65 : vector<1x128x128xbf16> to vector<128x128xbf16>
    %cst_33 = arith.constant dense<0.000000e+00> : vector<16x128xf32>
    %67 = tpu.matmul %64, %66, %cst_33 {dimension_numbers = #tpu.dot_dimension_numbers<[1], [0], [0], [1], [0, 0, 1, 1], [], []>} : vector<16x128xbf16>, vector<128x128xbf16>, vector<16x128xf32> -> vector<16x128xf32>
    %c2_34 = arith.constant 2 : index
    %c0_35 = arith.constant 0 : index
    %c0_36 = arith.constant 0 : index
    %68 = vector.load %arg2[%c2_34, %c0_35, %c0_36] : memref<3x1x128xf32, #tpu.memory_space<vmem>>, vector<1x1x128xf32>
    %69 = vector.shape_cast %68 : vector<1x1x128xf32> to vector<1x128xf32>
    %c2_37 = arith.constant 2 : index
    %c0_38 = arith.constant 0 : index
    %c0_39 = arith.constant 0 : index
    %70 = vector.load %arg3[%c2_37, %c0_38, %c0_39] : memref<3x1x128xf32, #tpu.memory_space<vmem>>, vector<1x1x128xf32>
    %71 = vector.shape_cast %70 : vector<1x1x128xf32> to vector<1x128xf32>
    %cst_40 = arith.constant dense<0.000000e+00> : vector<128xf32>
    %72 = vector.multi_reduction <add>, %67, %cst_40 [0] : vector<16x128xf32> to vector<128xf32>
    %73 = vector.shape_cast %72 : vector<128xf32> to vector<1x128xf32>
    %74 = arith.mulf %67, %67 : vector<16x128xf32>
    %cst_41 = arith.constant dense<0.000000e+00> : vector<128xf32>
    %75 = vector.multi_reduction <add>, %74, %cst_41 [0] : vector<16x128xf32> to vector<128xf32>
    %76 = vector.shape_cast %75 : vector<128xf32> to vector<1x128xf32>
    %cst_42 = arith.constant 6.250000e-02 : f32
    %77 = vector.broadcast %cst_42 : f32 to vector<1x128xf32>
    %78 = arith.mulf %73, %77 : vector<1x128xf32>
    %cst_43 = arith.constant 6.250000e-02 : f32
    %79 = vector.broadcast %cst_43 : f32 to vector<1x128xf32>
    %80 = arith.mulf %76, %79 : vector<1x128xf32>
    %81 = arith.mulf %78, %78 : vector<1x128xf32>
    %82 = arith.subf %80, %81 : vector<1x128xf32>
    %83 = vector.broadcast %78 : vector<1x128xf32> to vector<16x128xf32>
    %84 = arith.subf %67, %83 : vector<16x128xf32>
    %cst_44 = arith.constant 9.99999974E-6 : f32
    %85 = vector.broadcast %cst_44 : f32 to vector<1x128xf32>
    %86 = arith.addf %82, %85 : vector<1x128xf32>
    %87 = math.rsqrt %86 : vector<1x128xf32>
    %88 = vector.broadcast %87 : vector<1x128xf32> to vector<16x128xf32>
    %89 = arith.mulf %84, %88 : vector<16x128xf32>
    %90 = vector.broadcast %69 : vector<1x128xf32> to vector<16x128xf32>
    %91 = arith.mulf %89, %90 : vector<16x128xf32>
    %92 = vector.broadcast %71 : vector<1x128xf32> to vector<16x128xf32>
    %93 = arith.addf %91, %92 : vector<16x128xf32>
    %c0_45 = arith.constant 0 : index
    %c0_46 = arith.constant 0 : index
    %94 = vector.load %arg4[%c0_45, %c0_46] : memref<16x128xf32, #tpu.memory_space<vmem>>, vector<16x128xf32>
    tpu.vector_store %arg4[%c0_45, %c0_46], %93 {strides = array<i32>} : memref<16x128xf32, #tpu.memory_space<vmem>>, vector<16x128xf32>,
    return
  }
}

</mosaic_0001>

<bundles_post_ra>
// kernel: _proj_head_pallas.1
= control target key start
LH: loop header
LB: loop body
LE: loop exit
PB: predicated region body
PF: predicated region fallthrough
CT: control target
= control target key end

     0   :  { %9 = vsyncpa [#allocation3], 0  ;;  %s814_s0 = inlined_call_operand.vmem [shape: bf16[16,128], index: 0, kind: input, shape index: {}]   ;;  %s815_s1 = inlined_call_operand.hbm [shape: bf16[3,128,128], index: 1, kind: input, shape index: {}]   ;;  %s816_s2 = inlined_call_operand.vmem [shape: f32[3,1,128], index: 2, kind: input, shape index: {}]   ;;  %s817_s3 = inlined_call_operand.vmem [shape: f32[3,1,128], index: 3, kind: input, shape index: {}]   ;;  %s818_s4 = inlined_call_operand.hbm [shape: f32[16,128], index: 4, kind: output, shape index: {}]  }
   0x1   :  { %10 = vsyncpa [#allocation4], 0  ;;  %s724_s15 = smov [#allocation2]  }
   0x2   :  { %s18_s16 = sshll.u32 %s724_s15, 4  ;;  %s19_s16 = int_to_ptr.vmem [resolvable:$true] %s18_s16 }
   0x3   :  { %s688_s17 = scalar_lea.vmem %s19_s16, 3072  ;;  %p693_p1 = scmp.lt.s32.totalorder %s19_s16, %s19_s16 }
   0x4   :  { %p689_p0 = scmp.ne.s32.totalorder %s19_s16, %s688_s17  ;;  %p694_p2 = scmp.lt.s32.totalorder %s688_s17, %s688_s17 }
   0x6   :  { %p695_p3 = por %p694_p2, %p693_p1 }
   0x8   :  { %p696_p4 = pnand %p695_p3, %p689_p0 }
   0xa   :  { %699 = shalt.err (!%p696_p4)
}
   0xb   :  { %s725_s18 = smov 64   ;;  %s726_s19 = smov 4  }
   0xc   :  { %24 = dma.hbm_to_vmem [thread:$0]  %s815_s1, 3072, %s19_s16, [#allocation3], %s725_s18, %s725_s18, %s726_s19  }
   0xd   :  { %720 = dma.done.wait [#allocation3], 3072  }
   0xe   :  { %721 = vsyncadd [#allocation3], 4294964224  ;;  %v727_v0 = vmov 0.0   ;;  %vm728_vm0 = vmmov 0   ;;  %v649_v1 = vld [vmem:[#allocation2 + $0x38] sm:$0xff]   ;;  %v650_v2 = vld [vmem:[#allocation2 + $0x30] sm:$0xff]  }
   0xf   :  { %581 = vmatprep.subr.bf16.mxu0 %v727_v0  ;;  %597 = vmatprep.mubr.msk.bf16.mxu0 %vm728_vm0, %v727_v0  ;;  %v651_v3 = vld [vmem:[#allocation2 + $0x28] sm:$0xff]   ;;  %v652_v4 = vld [vmem:[#allocation2 + $0x20] sm:$0xff]   ;;  %v653_v5 = vld [vmem:[#allocation2 + $0x18] sm:$0xff]   ;;  %s729_s6 = smov [#allocation5]  }
  0x10   :  { %601 = vmatprep.subr.bf16.mxu1 %v727_v0  ;;  %617 = vmatprep.mubr.msk.bf16.mxu1 %vm728_vm0, %v727_v0  ;;  %v654_v6 = vld [vmem:[#allocation2 + $0x10] sm:$0xff]   ;;  %v655_v7 = vld [vmem:[#allocation2 + $0x8] sm:$0xff]   ;;  %v656_v8 = vld [vmem:[#allocation2] sm:$0xff]   ;;  %s507_s7 = sshll.u32 %s729_s6, 4  ;;  %s508_s7 = int_to_ptr.vmem [resolvable:$true] %s507_s7 }
  0x11   :  { %582 = vmatpush3.bf16.msra.mxu0 %v649_v1  ;;  %v657_v9 = vld [vmem:[%s814_s0] sm:$0xff]   ;;  %v658_v10 = vld [vmem:[#allocation2 + $0x78] sm:$0xff]   ;;  %v659_v11 = vld [vmem:[#allocation2 + $0x70] sm:$0xff]   ;;  %s700_s10 = scalar_lea.vmem %s508_s7, 256  ;;  %p705_p6 = scmp.lt.s32.totalorder %s508_s7, %s508_s7 }
  0x12   :  { %583 = vmatprep.subr.bf16.mxu0 %v727_v0  ;;  %602 = vmatpush3.bf16.msra.mxu1 %v658_v10  ;;  %v660_v12 = vld [vmem:[#allocation2 + $0x68] sm:$0xff]   ;;  %v661_v13 = vld [vmem:[#allocation2 + $0x60] sm:$0xff]   ;;  %v662_v14 = vld [vmem:[#allocation2 + $0x58] sm:$0xff]   ;;  %p701_p5 = scmp.ne.s32.totalorder %s508_s7, %s700_s10  ;;  %p706_p7 = scmp.lt.s32.totalorder %s700_s10, %s700_s10 }
  0x13   :  { %603 = vmatprep.subr.bf16.mxu1 %v727_v0  ;;  %v663_v15 = vld [vmem:[#allocation2 + $0x50] sm:$0xff]   ;;  %v664_v16 = vld [vmem:[#allocation2 + $0x48] sm:$0xff]   ;;  %v665_v17 = vld [vmem:[#allocation2 + $0x40] sm:$0xff]  }
  0x14   :  { %v528_v46 = vld [vmem:[%s816_s2] ss:$0 sm:$0xff]  ;;  %v666_v57 = vld [vmem:[#allocation2 + $0xb8] sm:$0xff]   ;;  %v667_v58 = vld [vmem:[#allocation2 + $0xb0] sm:$0xff]   ;;  %p707_p8 = por %p706_p7, %p705_p6 }
  0x15   :  { %584 = vmatpush3.bf16.msra.mxu0 %v650_v2  ;;  %v529_v49 = vld [vmem:[%s817_s3] ss:$0 sm:$0xff]  ;;  %v668_v59 = vld [vmem:[#allocation2 + $0xa8] sm:$0xff]   ;;  %v670_v61 = vld [vmem:[#allocation2 + $0x98] sm:$0xff]  }
  0x16   :  { %585 = vmatprep.subr.bf16.mxu0 %v727_v0  ;;  %604 = vmatpush3.bf16.msra.mxu1 %v659_v11  ;;  %v669_v60 = vld [vmem:[#allocation2 + $0xa0] sm:$0xff]   ;;  %v671_v62 = vld [vmem:[#allocation2 + $0x90] sm:$0xff]   ;;  %v672_v63 = vld [vmem:[#allocation2 + $0x88] sm:$0xff]   ;;  %p708_p9 = pnand %p707_p8, %p701_p5 }
  0x17   :  { %605 = vmatprep.subr.bf16.mxu1 %v727_v0  ;;  %v673_v1 = vld [vmem:[#allocation2 + $0x80] sm:$0xff]  }
  0x19   :  { %586 = vmatpush3.bf16.msra.mxu0 %v651_v3 }
  0x1a   :  { %587 = vmatprep.subr.bf16.mxu0 %v727_v0  ;;  %606 = vmatpush3.bf16.msra.mxu1 %v660_v12 }
  0x1b   :  { %607 = vmatprep.subr.bf16.mxu1 %v727_v0 }
  0x1d   :  { %588 = vmatpush3.bf16.msra.mxu0 %v652_v4 }
  0x1e   :  { %589 = vmatprep.subr.bf16.mxu0 %v727_v0  ;;  %608 = vmatpush3.bf16.msra.mxu1 %v661_v13 }
  0x1f   :  { %609 = vmatprep.subr.bf16.mxu1 %v727_v0 }
  0x21   :  { %590 = vmatpush3.bf16.msra.mxu0 %v653_v5 }
  0x22   :  { %591 = vmatprep.subr.bf16.mxu0 %v727_v0  ;;  %610 = vmatpush3.bf16.msra.mxu1 %v662_v14 }
  0x23   :  { %611 = vmatprep.subr.bf16.mxu1 %v727_v0 }
  0x25   :  { %592 = vmatpush3.bf16.msra.mxu0 %v654_v6 }
  0x26   :  { %593 = vmatprep.subr.bf16.mxu0 %v727_v0  ;;  %612 = vmatpush3.bf16.msra.mxu1 %v663_v15 }
  0x27   :  { %613 = vmatprep.subr.bf16.mxu1 %v727_v0 }
  0x29   :  { %594 = vmatpush3.bf16.msra.mxu0 %v655_v7 }
  0x2a   :  { %595 = vmatprep.subr.bf16.mxu0 %v727_v0  ;;  %614 = vmatpush3.bf16.msra.mxu1 %v664_v16 }
  0x2b   :  { %615 = vmatprep.subr.bf16.mxu1 %v727_v0 }
  0x2d   :  { %596 = vmatpush3.bf16.msra.mxu0 %v656_v8 }
  0x2e   :  { %621 = vmatprep.subr.bf16.mxu0 %v727_v0  ;;  %616 = vmatpush3.bf16.msra.mxu1 %v665_v17 }
  0x30   :  { %598 = vmatmul.mubr.bf16.vlgmr.msra.gmra.mxu0 %v657_v9 }
  0x31   :  { %637 = vmatprep.mubr.msk.bf16.mxu0 %vm728_vm0, %v727_v0  ;;  %622 = vmatpush3.bf16.msra.mxu0 %v666_v57 }
  0x32   :  { %623 = vmatprep.subr.bf16.mxu0 %v727_v0 }
  0x35   :  { %624 = vmatpush3.bf16.msra.mxu0 %v667_v58 }
  0x36   :  { %625 = vmatprep.subr.bf16.mxu0 %v727_v0 }
  0x39   :  { %626 = vmatpush3.bf16.msra.mxu0 %v668_v59 }
  0x3a   :  { %627 = vmatprep.subr.bf16.mxu0 %v727_v0 }
  0x3d   :  { %628 = vmatpush3.bf16.msra.mxu0 %v669_v60 }
  0x3e   :  { %629 = vmatprep.subr.bf16.mxu0 %v727_v0 }
  0x41   :  { %630 = vmatpush3.bf16.msra.mxu0 %v670_v61 }
  0x42   :  { %631 = vmatprep.subr.bf16.mxu0 %v727_v0 }
  0x45   :  { %632 = vmatpush3.bf16.msra.mxu0 %v671_v62 }
  0x46   :  { %633 = vmatprep.subr.bf16.mxu0 %v727_v0 }
  0x49   :  { %634 = vmatpush3.bf16.msra.mxu0 %v672_v63 }
  0x4a   :  { %635 = vmatprep.subr.bf16.mxu0 %v727_v0 }
  0x4d   :  { %636 = vmatpush3.bf16.msra.mxu0 %v673_v1 }
  0xf0   :  { %v139_v18 = vpop.f32.mrf.mxu0 }
  0xf1   :  { %v155_v21 = vmul.f32 %v139_v18, %v139_v18 }
  0xf2   :  { %v599_v19 = vpop.f32.mrf.mxu0 }
  0xf4   :  { %v142_v20 = vpop.f32.mrf.mxu0 }
  0xf5   :  { %v148_v22 = vadd.f32 %v142_v20, %v139_v18  ;;  %v156_v23 = vmul.f32 %v142_v20, %v142_v20 }
  0xf6   :  { %v600_v24 = vpop.f32.mrf.mxu0 }
  0xf7   :  { %v149_v25 = vrot.slane %v148_v22, 4  ;;  %v157_v26 = vadd.f32 %v156_v23, %v155_v21 }
  0xf9   :  { %v150_v27 = vadd.f32 %v149_v25, %v148_v22  ;;  %v158_v28 = vrot.slane %v157_v26, 4 }
  0xfb   :  { %v151_v29 = vrot.slane %v150_v27, 2  ;;  %v159_v30 = vadd.f32 %v158_v28, %v157_v26 }
  0xfd   :  { %v152_v31 = vadd.f32 %v151_v29, %v150_v27  ;;  %v160_v32 = vrot.slane %v159_v30, 2  ;;  %v540_v29 = vld [vmem:[%s816_s2 + $0x1] ss:$0 sm:$0xff] }
  0xff   :  { %v153_v33 = vrot.slane %v152_v31, 1  ;;  %v161_v34 = vadd.f32 %v160_v32, %v159_v30  ;;  %v541_v32 = vld [vmem:[%s817_s3 + $0x1] ss:$0 sm:$0xff] }
 0x101   :  { %v154_v35 = vadd.f32 %v153_v33, %v152_v31  ;;  %v162_v36 = vrot.slane %v161_v34, 1 }
 0x103   :  { %v163_v37 = vadd.f32 %v162_v36, %v161_v34  ;;  %v164_v38 = vmul.f32 0.0625, %v154_v35 }
 0x105   :  { %v165_v39 = vmul.f32 0.0625, %v163_v37  ;;  %v166_v40 = vmul.f32 %v164_v38, %v164_v38  ;;  %v169_v43 = vsub.f32 %v142_v20, %v164_v38  ;;  %v168_v44 = vsub.f32 %v139_v18, %v164_v38 }
 0x107   :  { %v167_v41 = vsub.f32 %v165_v39, %v166_v40 }
 0x109   :  { %v170_v42 = vadd.f32 1e-05, %v167_v41 }
 0x10b   :  { %674 = vrsqrt.f32 %v170_v42 }
 0x118   :  { %v675_v45 = vpop.eup %674 }
 0x119   :  { %v173_v47 = vmul.f32 %v675_v45, %v169_v43  ;;  %v172_v48 = vmul.f32 %v675_v45, %v168_v44 }
 0x11b   :  { %v181_v50 = vmul.f32 %v528_v46, %v173_v47  ;;  %v180_v51 = vmul.f32 %v528_v46, %v172_v48 }
 0x11d   :  { %v188_v52 = vadd.f32 %v529_v49, %v180_v51  ;;  %v189_v53 = vadd.f32 %v529_v49, %v181_v50 }
 0x11f   :  { %v190_v54 = vmax.f32 %v188_v52, 0.0  ;;  %v191_v55 = vmax.f32 %v189_v53, 0.0 }
 0x121   :  { %v192_v56 = vpack.c.bf16 %v191_v55, %v190_v54 }
 0x123   :  { %618 = vmatmul.mubr.bf16.vlgmr.msra.gmra.mxu1 %v192_v56 }
 0x1e3   :  { %v292_v2 = vpop.f32.mrf.mxu1 }
 0x1e4   :  { %v310_v5 = vmul.f32 %v292_v2, %v292_v2 }
 0x1e5   :  { %v619_v3 = vpop.f32.mrf.mxu1 }
 0x1e7   :  { %v295_v4 = vpop.f32.mrf.mxu1 }
 0x1e8   :  { %v303_v6 = vadd.f32 %v295_v4, %v292_v2  ;;  %v311_v7 = vmul.f32 %v295_v4, %v295_v4 }
 0x1e9   :  { %v620_v8 = vpop.f32.mrf.mxu1 }
 0x1ea   :  { %v304_v9 = vrot.slane %v303_v6, 4  ;;  %v312_v10 = vadd.f32 %v311_v7, %v310_v5  ;;  %v552_v5 = vld [vmem:[%s816_s2 + $0x2] ss:$0 sm:$0xff] }
 0x1eb   :  { %v553_v8 = vld [vmem:[%s817_s3 + $0x2] ss:$0 sm:$0xff] }
 0x1ec   :  { %v305_v11 = vadd.f32 %v304_v9, %v303_v6  ;;  %v313_v12 = vrot.slane %v312_v10, 4 }
 0x1ee   :  { %v306_v13 = vrot.slane %v305_v11, 2  ;;  %v314_v14 = vadd.f32 %v313_v12, %v312_v10 }
 0x1f0   :  { %v307_v15 = vadd.f32 %v306_v13, %v305_v11  ;;  %v315_v16 = vrot.slane %v314_v14, 2 }
 0x1f2   :  { %v308_v17 = vrot.slane %v307_v15, 1  ;;  %v316_v18 = vadd.f32 %v315_v16, %v314_v14 }
 0x1f4   :  { %v309_v0 = vadd.f32 %v308_v17, %v307_v15  ;;  %v317_v19 = vrot.slane %v316_v18, 1 }
 0x1f6   :  { %v318_v20 = vadd.f32 %v317_v19, %v316_v18  ;;  %v319_v21 = vmul.f32 0.0625, %v309_v0 }
 0x1f8   :  { %v320_v22 = vmul.f32 0.0625, %v318_v20  ;;  %v321_v23 = vmul.f32 %v319_v21, %v319_v21  ;;  %v323_v26 = vsub.f32 %v292_v2, %v319_v21  ;;  %v324_v27 = vsub.f32 %v295_v4, %v319_v21 }
 0x1fa   :  { %v322_v24 = vsub.f32 %v320_v22, %v321_v23 }
 0x1fc   :  { %v325_v25 = vadd.f32 1e-05, %v322_v24 }
 0x1fe   :  { %676 = vrsqrt.f32 %v325_v25 }
 0x20b   :  { %v677_v28 = vpop.eup %676 }
 0x20c   :  { %v327_v30 = vmul.f32 %v677_v28, %v323_v26  ;;  %v328_v31 = vmul.f32 %v677_v28, %v324_v27 }
 0x20e   :  { %v335_v33 = vmul.f32 %v540_v29, %v327_v30  ;;  %v336_v34 = vmul.f32 %v540_v29, %v328_v31 }
 0x210   :  { %v344_v35 = vadd.f32 %v541_v32, %v336_v34  ;;  %v343_v36 = vadd.f32 %v541_v32, %v335_v33 }
 0x212   :  { %v345_v37 = vmax.f32 %v343_v36, 0.0  ;;  %v346_v38 = vmax.f32 %v344_v35, 0.0 }
 0x214   :  { %v347_v39 = vpack.c.bf16 %v346_v38, %v345_v37 }
 0x216   :  { %638 = vmatmul.mubr.bf16.vlgmr.msra.gmra.mxu0 %v347_v39 }
 0x2d6   :  { %v447_v40 = vpop.f32.mrf.mxu0 }
 0x2d7   :  { %v465_v43 = vmul.f32 %v447_v40, %v447_v40 }
 0x2d8   :  { %v639_v41 = vpop.f32.mrf.mxu0 }
 0x2da   :  { %v450_v42 = vpop.f32.mrf.mxu0 }
 0x2db   :  { %v458_v44 = vadd.f32 %v450_v42, %v447_v40  ;;  %v466_v45 = vmul.f32 %v450_v42, %v450_v42 }
 0x2dc   :  { %v640_v46 = vpop.f32.mrf.mxu0 }
 0x2dd   :  { %v459_v47 = vrot.slane %v458_v44, 4  ;;  %v467_v48 = vadd.f32 %v466_v45, %v465_v43 }
 0x2df   :  { %v460_v49 = vadd.f32 %v459_v47, %v458_v44  ;;  %v468_v50 = vrot.slane %v467_v48, 4 }
 0x2e1   :  { %v461_v51 = vrot.slane %v460_v49, 2  ;;  %v469_v52 = vadd.f32 %v468_v50, %v467_v48 }
 0x2e3   :  { %v462_v53 = vadd.f32 %v461_v51, %v460_v49  ;;  %v470_v54 = vrot.slane %v469_v52, 2 }
 0x2e5   :  { %v463_v55 = vrot.slane %v462_v53, 1  ;;  %v471_v56 = vadd.f32 %v470_v54, %v469_v52 }
 0x2e7   :  { %v464_v57 = vadd.f32 %v463_v55, %v462_v53  ;;  %v472_v58 = vrot.slane %v471_v56, 1 }
 0x2e9   :  { %v473_v59 = vadd.f32 %v472_v58, %v471_v56  ;;  %v474_v60 = vmul.f32 0.0625, %v464_v57 }
 0x2eb   :  { %v475_v61 = vmul.f32 0.0625, %v473_v59  ;;  %v476_v62 = vmul.f32 %v474_v60, %v474_v60  ;;  %v478_v2 = vsub.f32 %v447_v40, %v474_v60  ;;  %v479_v3 = vsub.f32 %v450_v42, %v474_v60 }
 0x2ed   :  { %v477_v63 = vsub.f32 %v475_v61, %v476_v62 }
 0x2ef   :  { %v480_v1 = vadd.f32 1e-05, %v477_v63 }
 0x2f1   :  { %678 = vrsqrt.f32 %v480_v1 }
 0x2fe   :  { %v679_v4 = vpop.eup %678 }
 0x2ff   :  { %v482_v6 = vmul.f32 %v679_v4, %v478_v2  ;;  %v483_v7 = vmul.f32 %v679_v4, %v479_v3 }
 0x301   :  { %v490_v9 = vmul.f32 %v552_v5, %v482_v6  ;;  %v491_v10 = vmul.f32 %v552_v5, %v483_v7 }
 0x303   :  { %v499_v11 = vadd.f32 %v553_v8, %v491_v10  ;;  %v498_v12 = vadd.f32 %v553_v8, %v490_v9 }
 0x305   :  { %501 = vst [vmem:[#allocation5 + $0x8] sm:$0xff] %v499_v11  ;;  %500 = vst [vmem:[#allocation5] sm:$0xff] %v498_v12 }
 0x306   :  { %711 = shalt.err (!%p708_p9)
}
 0x307   :  { %s730_s2 = smov 128   ;;  %s731_s11 = smov 8  }
 0x308   :  { %513 = dma.vmem_to_hbm [thread:$0]  %s508_s7, 256, %s818_s4, [#allocation4], %s730_s2, %s730_s2, %s731_s11  }
 0x309   :  { %722 = dma.done.wait [#allocation4], 256  }
 0x30a   :  { %723 = vsyncadd [#allocation4], 4294967040 }
 0x30b   :  { %517 = vsyncpa [#allocation3], 1 }
 0x30c   :  { %518 = vsyncpa [#allocation4], 1 }

</bundles_post_ra>
